<compile_context>
chip_gen: v7x
topology: tpu7x:2x2x1
jax: 0.10.0
libtpu: 0.0.40
codegen_flags: <defaults>
</compile_context>

<pallas_src>
import jax
import jax.numpy as jnp
from jax.experimental import pallas as pl
from jax.experimental.pallas import tpu as pltpu


TB = 16384        # max batch tile (multiple of 128)
MIN_SPLIT = 1024  # below this, a single full-extent block beats 2 grid steps


def linear_kernel(x_ref, w_ref, b_ref, o_ref):
    # x_ref: (tb, 10) f32 VMEM tile (pipelined along the batch grid)
    # w_ref: (10, 2)  f32 VMEM tile (pre-transposed weight, resident)
    # b_ref: (1, 2)   f32 VMEM tile (bias, resident)
    # o_ref: (2, tb)  f32 lane-dense output tile (out^T)
    acc = jnp.dot(x_ref[...], w_ref[...], preferred_element_type=jnp.float32)
    o_ref[...] = (acc + b_ref[...]).T


def _round_up(n, m):
    return ((n + m - 1) // m) * m


def dummy_torch_model_forward(x, weight, bias, tb=TB):
    """x: (B, 10) f32; weight: (2, 10) f32 (PyTorch layout); bias: (2,) f32."""
    B, in_features = x.shape
    out_features = weight.shape[0]

    if B <= MIN_SPLIT:
        # Single full-extent block (exempt from the (8,128) divisibility rule).
        tb_eff = B
    else:
        # Tile must be a multiple of 128 so the lane-dense (2, tb) output block
        # is legal on partial batches; cap at TB and split into >= 2 tiles so
        # the "parallel" axis shards across v7x's two TensorCores.
        tb_eff = min(tb, _round_up(pl.cdiv(B, 2), 128))
    num_tiles = pl.cdiv(B, tb_eff)

    w_t = weight.T                          # (10, 2)  layout prep in plain JAX
    b2d = bias.reshape(1, out_features)     # (1, 2)

    out_t = pl.pallas_call(
        linear_kernel,
        out_shape=jax.ShapeDtypeStruct((out_features, B), jnp.float32),
        grid=(num_tiles,),
        in_specs=[
            # x: tiled along batch -> double-buffered across grid steps.
            pl.BlockSpec((tb_eff, in_features), lambda i: (i, 0)),
            # weight / bias: constant block index -> DMA'd once, VMEM-resident.
            pl.BlockSpec((in_features, out_features), lambda i: (0, 0)),
            pl.BlockSpec((1, out_features), lambda i: (0, 0)),
        ],
        # Lane-dense output: batch lives on the 128-lane axis.
        out_specs=pl.BlockSpec((out_features, tb_eff), lambda i: (0, i)),
        compiler_params=pltpu.CompilerParams(
            dimension_semantics=("parallel",),      # dual-TC sharding on v7x
            vmem_limit_bytes=40 * 1024 * 1024,      # > v5e 16 MiB default, < v7x 64 MiB physical
        ),
        cost_estimate=pl.CostEstimate(
            flops=2 * B * in_features * out_features,
            bytes_accessed=4 * (B * (in_features + out_features)
                                + in_features * out_features + out_features),
            transcendentals=0,
        ),
    )(x, w_t, b2d)

    # Transpose the tiny (2, B) result back; 8 B/row, negligible vs the
    # 40 B/row input read, and preserves the nn.Linear output layout.
    return out_t.T


if __name__ == "__main__":
    key = jax.random.PRNGKey(0)
    k_x, k_w, k_b, k_x2, k_x3 = jax.random.split(key, 5)

    in_features, out_features = 10, 2

    # Deterministic parameter init mimicking torch.nn.Linear defaults:
    # U(-1/sqrt(fan_in), 1/sqrt(fan_in))
    bound = 1.0 / jnp.sqrt(jnp.float32(in_features))
    weight = jax.random.uniform(k_w, (out_features, in_features),
                                dtype=jnp.float32, minval=-bound, maxval=bound)
    bias = jax.random.uniform(k_b, (out_features,),
                              dtype=jnp.float32, minval=-bound, maxval=bound)

    # Small demo batch (single full-extent tile).
    B = 8
    x = jax.random.normal(k_x, (B, in_features), dtype=jnp.float32)
    out = jax.block_until_ready(dummy_torch_model_forward(x, weight, bias))
    ref = x @ weight.T + bias
    assert out.shape == (B, out_features)
    assert jnp.allclose(out, ref, atol=1e-5, rtol=1e-5)

    # Ragged batch: 2-way split, partial last block, no padding pass.
    B2 = 4101
    x2 = jax.random.normal(k_x2, (B2, in_features), dtype=jnp.float32)
    out2 = jax.block_until_ready(dummy_torch_model_forward(x2, weight, bias))
    ref2 = x2 @ weight.T + bias
    assert out2.shape == (B2, out_features)
    assert jnp.allclose(out2, ref2, atol=1e-5, rtol=1e-5)

    # Large ragged batch: hits the TB=16384 tile cap with a partial last block.
    B3 = 33000
    x3 = jax.random.normal(k_x3, (B3, in_features), dtype=jnp.float32)
    out3 = jax.block_until_ready(dummy_torch_model_forward(x3, weight, bias))
    ref3 = x3 @ weight.T + bias
    assert out3.shape == (B3, out_features)
    assert jnp.allclose(out3, ref3, atol=1e-5, rtol=1e-5)

    print("KERNEL_OK")
</pallas_src>

<mosaic_0001>
module attributes {stable_mosaic.version = 11 : i64} {
  func.func @linear_kernel(%arg0: i32, %arg1: memref<8x10xf32, #tpu.memory_space<vmem>>, %arg2: memref<10x2xf32, #tpu.memory_space<vmem>>, %arg3: memref<1x2xf32, #tpu.memory_space<vmem>>, %arg4: memref<2x8xf32, #tpu.memory_space<vmem>>) attributes {dimension_semantics = [#tpu.dimension_semantics<parallel>], iteration_bounds = array<i64: 1>, scalar_prefetch = 0 : i64, scratch_operands = 0 : i64, tpu.core_type = #tpu.core_type<tc>, window_params = [{transform_indices = @transform_0, window_bounds = array<i64: 8, 10>}, {pipeline_mode = #tpu.pipeline_mode<synchronous>, transform_indices = @transform_1, window_bounds = array<i64: 10, 2>}, {pipeline_mode = #tpu.pipeline_mode<synchronous>, transform_indices = @transform_2, window_bounds = array<i64: 1, 2>}, {transform_indices = @transform_3, window_bounds = array<i64: 2, 8>}]} {
    %c0 = arith.constant 0 : index
    %c0_0 = arith.constant 0 : index
    %0 = vector.load %arg1[%c0, %c0_0] : memref<8x10xf32, #tpu.memory_space<vmem>>, vector<8x10xf32>
    %c0_1 = arith.constant 0 : index
    %c0_2 = arith.constant 0 : index
    %1 = vector.load %arg2[%c0_1, %c0_2] : memref<10x2xf32, #tpu.memory_space<vmem>>, vector<10x2xf32>
    %cst = arith.constant dense<0.000000e+00> : vector<8x2xf32>
    %2 = tpu.matmul %0, %1, %cst {dimension_numbers = #tpu.dot_dimension_numbers<[1], [0], [0], [1], [0, 0, 1, 1], [], []>} : vector<8x10xf32>, vector<10x2xf32>, vector<8x2xf32> -> vector<8x2xf32>
    %c0_3 = arith.constant 0 : index
    %c0_4 = arith.constant 0 : index
    %3 = vector.load %arg3[%c0_3, %c0_4] : memref<1x2xf32, #tpu.memory_space<vmem>>, vector<1x2xf32>
    %4 = vector.broadcast %3 : vector<1x2xf32> to vector<8x2xf32>
    %5 = arith.addf %2, %4 : vector<8x2xf32>
    %6 = tpu.transpose %5, [1, 0] : vector<8x2xf32> -> vector<2x8xf32>
    %c0_5 = arith.constant 0 : index
    %c0_6 = arith.constant 0 : index
    %7 = vector.load %arg4[%c0_5, %c0_6] : memref<2x8xf32, #tpu.memory_space<vmem>>, vector<2x8xf32>
    tpu.vector_store %arg4[%c0_5, %c0_6], %6 {strides = array<i32>} : memref<2x8xf32, #tpu.memory_space<vmem>>, vector<2x8xf32>,
    return
  }
  func.func @transform_0(%arg0: i32) -> (i32, i32) {
    %c0_i32 = arith.constant 0 : i32
    %c0_i32_0 = arith.constant 0 : i32
    return %arg0, %c0_i32 : i32, i32
  }
  func.func @transform_1(%arg0: i32) -> (i32, i32) {
    %c0_i32 = arith.constant 0 : i32
    %c0_i32_0 = arith.constant 0 : i32
    %c0_i32_1 = arith.constant 0 : i32
    return %c0_i32, %c0_i32_0 : i32, i32
  }
  func.func @transform_2(%arg0: i32) -> (i32, i32) {
    %c0_i32 = arith.constant 0 : i32
    %c0_i32_0 = arith.constant 0 : i32
    %c0_i32_1 = arith.constant 0 : i32
    return %c0_i32, %c0_i32_0 : i32, i32
  }
  func.func @transform_3(%arg0: i32) -> (i32, i32) {
    %c0_i32 = arith.constant 0 : i32
    %c0_i32_0 = arith.constant 0 : i32
    return %c0_i32, %arg0 : i32, i32
  }
}

</mosaic_0001>

<bundles_post_ra>
// kernel: tpu_custom_call.1
= control target key start
LH: loop header
LB: loop body
LE: loop exit
PB: predicated region body
PF: predicated region fallthrough
CT: control target
= control target key end

     0   :  { %vm29_vm0 = vcmask 1041408   ;;  %v197_v2 = vmov 0.0|0.0   ;;  %vm198_vm1 = vmmov 1   ;;  %vm199_vm3 = vmmov 0   ;;  %s246_s0 = inlined_call_operand.vmem [shape: f32[8,10], index: 0, kind: input, shape index: {}]   ;;  %s247_s1 = inlined_call_operand.vmem [shape: f32[10,2], index: 1, kind: input, shape index: {}]   ;;  %s248_s2 = inlined_call_operand.vmem [shape: f32[1,2], index: 2, kind: input, shape index: {}]   ;;  %s249_s3 = inlined_call_operand.hbm [shape: f32[2,8], index: 3, kind: output, shape index: {}]  }
   0x1   :  { %v16_v0 = vld [vmem:[%s247_s1] sm:$0xff]  ;;  %v17_v1 = vld [vmem:[%s247_s1 + $0x8] sm:$0x3]  ;;  %164 = vmatprep.subr.bf16.mxu0 %v197_v2  ;;  %vm166_vm2 = vmpackc.low %vm29_vm0, %vm198_vm1  ;;  %v200_v4 = vmov 0.0  }
   0x2   :  { %v165_v3 = vpack.c.bf16 %v17_v1, %v16_v0  ;;  %161 = vmatprep.mubr.msk.f32.mxu0 %vm199_vm3, %v200_v4 }
   0x3   :  { %8 = vsyncpa [#allocation3], 0  ;;  %v15_v5 = vld [vmem:[%s246_s0] sm:$0xff]  ;;  %vm25_vm4 = vcmask 80896   ;;  %s201_s1 = smov [#allocation2]   ;;  %vm135_vm5 = vcmask 58368  }
   0x4   :  { %167 = vmatpush3.bf16.msk.msra.mxu0 %vm166_vm2, %v165_v3  ;;  %v151_v6 = vld [vmem:[%s248_s2] ss:$0 sm:$0xff]  ;;  %s143_s20 = sshll.u32 %s201_s1, 4  ;;  %s144_s20 = int_to_ptr.vmem [resolvable:$true] %s143_s20 }
   0x5   :  { %s173_s21 = scalar_lea.vmem %s144_s20, 32  ;;  %p178_p1 = scmp.lt.s32.totalorder %s144_s20, %s144_s20 }
   0x6   :  { %p174_p0 = scmp.ne.s32.totalorder %s144_s20, %s173_s21  ;;  %p179_p2 = scmp.lt.s32.totalorder %s173_s21, %s173_s21 }
   0x7   :  { %162 = vmatmul.mubr.msk.f32.vlgmr.msra.gmra.mrb[0].mxu0 %vm25_vm4, %v15_v5 }
   0x8   :  { %p180_p3 = por %p179_p2, %p178_p1 }
   0xa   :  { %p181_p4 = pnand %p180_p3, %p174_p0 }
  0xda   :  { %v99_v7 = vpop.f32.mrb[0].mxu0 }
  0xdb   :  { %v163_v8 = vpop.f32.mrb[1].mxu0  ;;  %v100_v9 = vadd.f32 %v151_v6, %v99_v7 }
  0xdd   :  { %103 = vxpose.xlu0.b32.start.end [1/1] (short) (narrow) %v100_v9, 8 }
 0x15d   :  { %v119_v10 = vpop.trf.xlu0 }
 0x15e   :  { %136 = vst.msk [vmem:[#allocation2] sm:$0x3] %vm135_vm5, %v119_v10 }
 0x15f   :  { %184 = shalt.err (!%p181_p4)
}
 0x160   :  { %s185_s2 = scalar_lea.hbm %s249_s3, 32 }
 0x161   :  { %p186_p5 = scmp.ne.s32.totalorder %s249_s3, %s185_s2  ;;  %p189_p6 = scmp.lt.u32.totalorder %s185_s2, %s249_s3 }
 0x163   :  { %p191_p7 = pnand %p189_p6, %p186_p5 }
 0x165   :  { %194 = shalt.err (!%p191_p7)
}
 0x166   :  { %146 = dma.vmem_to_hbm [thread:$0]  %s144_s20, 32, %s249_s3, [#allocation3]  }
 0x167   :  { %195 = dma.done.wait [#allocation3], 32  }
 0x168   :  { %196 = vsyncadd [#allocation3], 4294967264 }
 0x169   :  { %150 = vsyncpa [#allocation3], 1 }

</bundles_post_ra>
